<compile_context>
chip_gen: v7x
topology: tpu7x:2x2x1
jax: 0.10.0
libtpu: 0.0.40
codegen_flags: <defaults>
</compile_context>

<pallas_src>
import jax
import jax.numpy as jnp
from jax.experimental import pallas as pl
from jax.experimental.pallas import tpu as pltpu


def _cdiv(a, b):
    return -(-a // b)


def _round_up(x, m):
    return _cdiv(x, m) * m


def _make_decoder_kernel(num_streams, num_layers):
    """Builds the (batch, row-tile) kernel for a given stream count / MLP depth.

    Ref layout:
      act_refs[0:num_streams] : (1, tile_n, dim_i) activation blocks
      w1_refs[0:num_streams]  : (dim_i, h1) row-slices of the first Linear weight
      b1, (w_i, b_i) for layers 2..num_layers
      out_ref                 : (1, tile_n, 2*y_dim) -- mu in [:y_dim], sigma in [y_dim:]
    """

    def kernel(*refs):
        out_ref = refs[-1]
        body = refs[:-1]
        act_refs = body[:num_streams]
        w1_refs = body[num_streams:2 * num_streams]
        rest = body[2 * num_streams:]  # b1, w2, b2, ..., wL, bL

        # Layer 1: implicit concat -> sum of partial matmuls (single matmul when
        # the wrapper fused the streams).
        h = jnp.dot(act_refs[0][0], w1_refs[0][...],
                    preferred_element_type=jnp.float32)
        for a_ref, w_ref in zip(act_refs[1:], w1_refs[1:]):
            h += jnp.dot(a_ref[0], w_ref[...],
                         preferred_element_type=jnp.float32)
        h = jnp.maximum(h + rest[0][...], 0.0)

        # Layers 2..L (ReLU between layers, none on the head).
        idx = 1
        for li in range(1, num_layers):
            w_ref, b_ref = rest[idx], rest[idx + 1]
            idx += 2
            h = jnp.dot(h, w_ref[...], preferred_element_type=jnp.float32) + b_ref[...]
            if li < num_layers - 1:
                h = jnp.maximum(h, 0.0)

        # Head: single lane-dense (tile_n, 2*y_dim) output slab.
        y = h.shape[-1] // 2
        if y % 128 == 0:
            # Lane-aligned halves: softplus only on the sigma half (halves EUP work).
            out_ref[0, :, :y] = h[:, :y]
            out_ref[0, :, y:] = 0.1 + 0.9 * jnp.logaddexp(h[:, y:], 0.0)
        else:
            # Narrow head: per-lane select, one full-width unmasked store.
            col = jax.lax.broadcasted_iota(jnp.int32, h.shape, dimension=1)
            sig = 0.1 + 0.9 * jnp.logaddexp(h, 0.0)
            out_ref[0] = jnp.where(col >= y, sig, h)

    return kernel


def decoder_forward(r, z, target_x, params, *, use_deterministic_path=True,
                    row_tile=1024, fuse_threshold=128, return_combined=False):
    """JAX wrapper: stream fusion / tiling glue in JAX, MLP hot path in Pallas.

    params = [w1, b1, w2, b2, ..., wL, bL] with w_i: (in, out), b_i: (1, out).
    Returns (mu, sigma) -- the Normal(mu, sigma) is fully described by them.
    """
    assert len(params) % 2 == 0
    num_layers = len(params) // 2
    assert num_layers >= 2, "expect at least one hidden layer + head"
    w1 = params[0]
    B, N, latent = z.shape
    x_dim = target_x.shape[-1]
    out_dim = params[-2].shape[1]
    y_dim = out_dim // 2
    d_in = w1.shape[0]

    # ---- Stream construction (layer-1 fusion vs. split-K) --------------------
    # streams: list of (activation (B_or_1, N, dim), w1 row-slice, ignore_batch)
    if d_in <= fuse_threshold:
        # Small total K: one matmul for layer 1; HBM concat of tiny tensors is cheap.
        xb = target_x if target_x.shape[0] == B else jnp.broadcast_to(
            target_x, (B, N, x_dim))
        pieces = [r, z, xb] if use_deterministic_path else [z, xb]
        fused = jnp.concatenate(pieces, axis=-1)
        streams = [(fused, w1, False)]
    else:
        # Large K: keep split-K; merge [r, z] (same batch/layout), keep target_x
        # separate so it is never broadcast to (B, N, x_dim) in HBM.
        if use_deterministic_path:
            rz = jnp.concatenate([r, z], axis=-1)
        else:
            rz = z
        k_rz = rz.shape[-1]
        streams = [(rz, w1[:k_rz], False),
                   (target_x, w1[k_rz:], target_x.shape[0] == 1)]

    # ---- Row tiling: near-divisor tiles, minimal padding ---------------------
    n_tiles = max(1, _cdiv(N, row_tile))
    if B == 1 and n_tiles == 1 and N > 8:
        # v7x has 2 TensorCores: make sure a "parallel" axis has >= 2 steps.
        n_tiles = 2
    tile_n = _round_up(_cdiv(N, n_tiles), 8)

    def _vmem_bytes(t):
        act = sum(t * a.shape[-1] * 4 * 2 for a, _, _ in streams)   # double-buffered
        out = t * out_dim * 4 * 2
        wgt = sum(int(p.size) * 4 * 2 for p in params)
        return act + out + wgt

    VMEM_DATA_BUDGET = 32 << 20   # conservative across v5e/v6e/v7x
    while _vmem_bytes(tile_n) > VMEM_DATA_BUDGET and tile_n > 8:
        n_tiles += 1
        tile_n = _round_up(_cdiv(N, n_tiles), 8)

    n_pad = _round_up(N, tile_n)
    grid = (B, n_pad // tile_n)

    def pad_n(a):
        if a.shape[1] == n_pad:
            return a                      # no extra HBM copy in the common case
        return jnp.pad(a, ((0, 0), (0, n_pad - a.shape[1]), (0, 0)))

    acts = tuple(pad_n(a) for a, _, _ in streams)
    w1_slices = tuple(w for _, w, _ in streams)

    # ---- BlockSpecs -----------------------------------------------------------
    def act_spec(a, ignore_batch):
        dim = a.shape[-1]
        if ignore_batch:
            return pl.BlockSpec((1, tile_n, dim), lambda b, n: (0, n, 0))
        return pl.BlockSpec((1, tile_n, dim), lambda b, n: (b, n, 0))

    def full_spec(shape):
        # Constant block index -> DMA'd once, stays resident in VMEM.
        return pl.BlockSpec(shape, lambda b, n, _s=len(shape): (0,) * _s)

    in_specs = (
        [act_spec(a, flag) for a, (_, _, flag) in zip(acts, streams)]
        + [full_spec(w.shape) for w in w1_slices]
        + [full_spec(p.shape) for p in params[1:]]   # b1, w2, b2, ..., wL, bL
    )

    vmem_limit = int(min(48 << 20, max(2 * _vmem_bytes(tile_n), 16 << 20)))

    kernel = _make_decoder_kernel(len(streams), num_layers)
    out = pl.pallas_call(
        kernel,
        out_shape=jax.ShapeDtypeStruct((B, n_pad, out_dim), jnp.float32),
        grid_spec=pltpu.PrefetchScalarGridSpec(
            num_scalar_prefetch=0,
            grid=grid,
            in_specs=in_specs,
            out_specs=pl.BlockSpec((1, tile_n, out_dim), lambda b, n: (b, n, 0)),
        ),
        compiler_params=pltpu.CompilerParams(
            dimension_semantics=("parallel", "parallel"),
            vmem_limit_bytes=vmem_limit),
    )(*acts, *w1_slices, *params[1:])

    if n_pad != N:
        out = out[:, :N, :]
    if return_combined:
        return out                       # single lane-dense (B, N, 2*y_dim) slab
    mu = out[..., :y_dim]
    sigma = out[..., y_dim:]
    # (dist, mu, sigma) in PyTorch -> dist is fully described by (mu, sigma).
    return mu, sigma


# ---------------------------- test / validation -----------------------------

def _init_params(key, d_in, hidden_dim_list):
    """Deterministic Linear-layer parameter init (Kaiming-uniform-ish)."""
    params = []
    dims = [d_in] + list(hidden_dim_list)
    for li in range(len(hidden_dim_list)):
        key, kw, kb = jax.random.split(key, 3)
        fan_in = dims[li]
        bound = 1.0 / jnp.sqrt(fan_in)
        w = jax.random.uniform(kw, (dims[li], dims[li + 1]), jnp.float32, -bound, bound)
        b = jax.random.uniform(kb, (1, dims[li + 1]), jnp.float32, -bound, bound)
        params += [w, b]
    return params


def _reference_forward(r, z, target_x, params, use_deterministic_path=True):
    """Pure-JAX reference for validation."""
    B = r.shape[0]
    target_x = jnp.broadcast_to(target_x, (B, target_x.shape[1], target_x.shape[2]))
    if use_deterministic_path:
        z = jnp.concatenate([r, z], axis=-1)
    h = jnp.concatenate([z, target_x], axis=-1)
    num_layers = len(params) // 2
    for li in range(num_layers):
        w, b = params[2 * li], params[2 * li + 1]
        h = h @ w + b
        if li < num_layers - 1:
            h = jnp.maximum(h, 0.0)
    y = h.shape[-1] // 2
    mu, log_sigma = h[..., :y], h[..., y:]
    sigma = 0.1 + 0.9 * jnp.logaddexp(log_sigma, 0.0)
    return mu, sigma


def _check(B, N, x_dim, y_dim, latent_dim, mid_hidden_dim_list, key):
    hidden_dim_list = mid_hidden_dim_list + [y_dim * 2]
    d_in = 2 * latent_dim + x_dim
    key, kr, kz, kx = jax.random.split(key, 4)
    r = jax.random.normal(kr, (B, N, latent_dim), jnp.float32)
    z = jax.random.normal(kz, (B, N, latent_dim), jnp.float32)
    target_x = jax.random.normal(kx, (1, N, x_dim), jnp.float32)
    params = _init_params(key, d_in, hidden_dim_list)

    mu, sigma = decoder_forward(r, z, target_x, params, use_deterministic_path=True)
    jax.block_until_ready(mu)
    jax.block_until_ready(sigma)

    mu_ref, sigma_ref = _reference_forward(r, z, target_x, params, True)
    assert mu.shape == (B, N, y_dim) and sigma.shape == (B, N, y_dim)
    assert jnp.allclose(mu, mu_ref, atol=1e-5, rtol=1e-5)
    assert jnp.allclose(sigma, sigma_ref, atol=1e-5, rtol=1e-5)
    assert bool(jnp.all(sigma > 0.0))


if __name__ == "__main__":
    key = jax.random.PRNGKey(0)
    k1, k2, k3, k4, k5 = jax.random.split(key, 5)
    # Small, module-consistent shapes; fused layer-1, no padding, narrow head.
    _check(B=2, N=8, x_dim=4, y_dim=4, latent_dim=8,
           mid_hidden_dim_list=[32, 32], key=k1)
    # Non-multiple-of-8 N exercises the minimal (<=7 row) padding path.
    _check(B=3, N=13, x_dim=4, y_dim=4, latent_dim=8,
           mid_hidden_dim_list=[32, 32], key=k2)
    # Wide lane-aligned head (2*y_dim == 256): split mu / softplus-sigma stores.
    _check(B=2, N=16, x_dim=4, y_dim=128, latent_dim=8,
           mid_hidden_dim_list=[32, 32], key=k3)
    # Large input dim (>128): split-K path ([r,z] merged, target_x separate).
    _check(B=2, N=13, x_dim=64, y_dim=4, latent_dim=128,
           mid_hidden_dim_list=[64, 32], key=k4)
    # B == 1: N is split into >= 2 row tiles (v7x two-TensorCore sharding).
    _check(B=1, N=24, x_dim=4, y_dim=4, latent_dim=8,
           mid_hidden_dim_list=[32, 32], key=k5)
    print("KERNEL_OK")
</pallas_src>

<mosaic_0001>
module attributes {stable_mosaic.version = 11 : i64} {
  func.func @kernel(%arg0: i32, %arg1: i32, %arg2: memref<1x8x20xf32, #tpu.memory_space<vmem>>, %arg3: memref<20x32xf32, #tpu.memory_space<vmem>>, %arg4: memref<1x32xf32, #tpu.memory_space<vmem>>, %arg5: memref<32x32xf32, #tpu.memory_space<vmem>>, %arg6: memref<1x32xf32, #tpu.memory_space<vmem>>, %arg7: memref<32x8xf32, #tpu.memory_space<vmem>>, %arg8: memref<1x8xf32, #tpu.memory_space<vmem>>, %arg9: memref<1x8x8xf32, #tpu.memory_space<vmem>>) attributes {dimension_semantics = [#tpu.dimension_semantics<parallel>, #tpu.dimension_semantics<parallel>], iteration_bounds = array<i64: 2, 1>, scalar_prefetch = 0 : i64, scratch_operands = 0 : i64, tpu.core_type = #tpu.core_type<tc>, window_params = [{transform_indices = @transform_0, window_bounds = array<i64: 1, 8, 20>}, {pipeline_mode = #tpu.pipeline_mode<synchronous>, transform_indices = @transform_1, window_bounds = array<i64: 20, 32>}, {pipeline_mode = #tpu.pipeline_mode<synchronous>, transform_indices = @transform_2, window_bounds = array<i64: 1, 32>}, {pipeline_mode = #tpu.pipeline_mode<synchronous>, transform_indices = @transform_3, window_bounds = array<i64: 32, 32>}, {pipeline_mode = #tpu.pipeline_mode<synchronous>, transform_indices = @transform_4, window_bounds = array<i64: 1, 32>}, {pipeline_mode = #tpu.pipeline_mode<synchronous>, transform_indices = @transform_5, window_bounds = array<i64: 32, 8>}, {pipeline_mode = #tpu.pipeline_mode<synchronous>, transform_indices = @transform_6, window_bounds = array<i64: 1, 8>}, {transform_indices = @transform_7, window_bounds = array<i64: 1, 8, 8>}]} {
    %c0 = arith.constant 0 : index
    %c0_0 = arith.constant 0 : index
    %c0_1 = arith.constant 0 : index
    %0 = vector.load %arg2[%c0, %c0_0, %c0_1] : memref<1x8x20xf32, #tpu.memory_space<vmem>>, vector<1x8x20xf32>
    %1 = vector.shape_cast %0 : vector<1x8x20xf32> to vector<8x20xf32>
    %c0_2 = arith.constant 0 : index
    %c0_3 = arith.constant 0 : index
    %2 = vector.load %arg3[%c0_2, %c0_3] : memref<20x32xf32, #tpu.memory_space<vmem>>, vector<20x32xf32>
    %cst = arith.constant dense<0.000000e+00> : vector<8x32xf32>
    %3 = tpu.matmul %1, %2, %cst {dimension_numbers = #tpu.dot_dimension_numbers<[1], [0], [0], [1], [0, 0, 1, 1], [], []>} : vector<8x20xf32>, vector<20x32xf32>, vector<8x32xf32> -> vector<8x32xf32>
    %c0_4 = arith.constant 0 : index
    %c0_5 = arith.constant 0 : index
    %4 = vector.load %arg4[%c0_4, %c0_5] : memref<1x32xf32, #tpu.memory_space<vmem>>, vector<1x32xf32>
    %5 = vector.broadcast %4 : vector<1x32xf32> to vector<8x32xf32>
    %6 = arith.addf %3, %5 : vector<8x32xf32>
    %cst_6 = arith.constant 0.000000e+00 : f32
    %7 = vector.broadcast %cst_6 : f32 to vector<8x32xf32>
    %8 = arith.maximumf %6, %7 : vector<8x32xf32>
    %c0_7 = arith.constant 0 : index
    %c0_8 = arith.constant 0 : index
    %9 = vector.load %arg5[%c0_7, %c0_8] : memref<32x32xf32, #tpu.memory_space<vmem>>, vector<32x32xf32>
    %cst_9 = arith.constant dense<0.000000e+00> : vector<8x32xf32>
    %10 = tpu.matmul %8, %9, %cst_9 {dimension_numbers = #tpu.dot_dimension_numbers<[1], [0], [0], [1], [0, 0, 1, 1], [], []>} : vector<8x32xf32>, vector<32x32xf32>, vector<8x32xf32> -> vector<8x32xf32>
    %c0_10 = arith.constant 0 : index
    %c0_11 = arith.constant 0 : index
    %11 = vector.load %arg6[%c0_10, %c0_11] : memref<1x32xf32, #tpu.memory_space<vmem>>, vector<1x32xf32>
    %12 = vector.broadcast %11 : vector<1x32xf32> to vector<8x32xf32>
    %13 = arith.addf %10, %12 : vector<8x32xf32>
    %cst_12 = arith.constant 0.000000e+00 : f32
    %14 = vector.broadcast %cst_12 : f32 to vector<8x32xf32>
    %15 = arith.maximumf %13, %14 : vector<8x32xf32>
    %c0_13 = arith.constant 0 : index
    %c0_14 = arith.constant 0 : index
    %16 = vector.load %arg7[%c0_13, %c0_14] : memref<32x8xf32, #tpu.memory_space<vmem>>, vector<32x8xf32>
    %cst_15 = arith.constant dense<0.000000e+00> : vector<8x8xf32>
    %17 = tpu.matmul %15, %16, %cst_15 {dimension_numbers = #tpu.dot_dimension_numbers<[1], [0], [0], [1], [0, 0, 1, 1], [], []>} : vector<8x32xf32>, vector<32x8xf32>, vector<8x8xf32> -> vector<8x8xf32>
    %c0_16 = arith.constant 0 : index
    %c0_17 = arith.constant 0 : index
    %18 = vector.load %arg8[%c0_16, %c0_17] : memref<1x8xf32, #tpu.memory_space<vmem>>, vector<1x8xf32>
    %19 = vector.broadcast %18 : vector<1x8xf32> to vector<8x8xf32>
    %20 = arith.addf %17, %19 : vector<8x8xf32>
    %21 = tpu.iota {dimensions = array<i32: 1>} : vector<8x8xi32>
    %cst_18 = arith.constant 0.000000e+00 : f32
    %22 = vector.broadcast %cst_18 : f32 to vector<8x8xf32>
    %23 = arith.maximumf %20, %22 : vector<8x8xf32>
    %24 = vector.broadcast %cst_18 : f32 to vector<8x8xf32>
    %25 = arith.subf %20, %24 : vector<8x8xf32>
    %26 = arith.cmpf one, %25, %25 : vector<8x8xf32>
    %27 = vector.broadcast %cst_18 : f32 to vector<8x8xf32>
    %28 = arith.addf %20, %27 : vector<8x8xf32>
    %29 = math.absf %25 : vector<8x8xf32>
    %cst_19 = arith.constant 0.000000e+00 : f32
    %30 = vector.broadcast %cst_19 : f32 to vector<8x8xf32>
    %31 = arith.subf %30, %29 : vector<8x8xf32>
    %32 = math.exp %31 : vector<8x8xf32>
    %33 = math.log1p %32 : vector<8x8xf32>
    %34 = arith.addf %23, %33 : vector<8x8xf32>
    %35 = arith.select %26, %28, %34 : vector<8x8xi1>, vector<8x8xf32>
    %cst_20 = arith.constant 0.899999976 : f32
    %36 = vector.broadcast %cst_20 : f32 to vector<8x8xf32>
    %37 = arith.mulf %36, %35 : vector<8x8xf32>
    %cst_21 = arith.constant 1.000000e-01 : f32
    %38 = vector.broadcast %cst_21 : f32 to vector<8x8xf32>
    %39 = arith.addf %38, %37 : vector<8x8xf32>
    %c4_i32 = arith.constant 4 : i32
    %40 = vector.broadcast %c4_i32 : i32 to vector<8x8xi32>
    %41 = arith.cmpi sge, %21, %40 : vector<8x8xi32>
    %42 = arith.select %41, %39, %20 : vector<8x8xi1>, vector<8x8xf32>
    %c0_22 = arith.constant 0 : index
    %c0_23 = arith.constant 0 : index
    %c0_24 = arith.constant 0 : index
    %43 = vector.load %arg9[%c0_22, %c0_23, %c0_24] : memref<1x8x8xf32, #tpu.memory_space<vmem>>, vector<1x8x8xf32>
    %44 = vector.shape_cast %43 : vector<1x8x8xf32> to vector<8x8xf32>
    %45 = vector.shape_cast %42 : vector<8x8xf32> to vector<1x8x8xf32>
    tpu.vector_store %arg9[%c0_22, %c0_23, %c0_24], %45 {strides = array<i32>} : memref<1x8x8xf32, #tpu.memory_space<vmem>>, vector<1x8x8xf32>,
    return
  }
  func.func @transform_0(%arg0: i32, %arg1: i32) -> (i32, i32, i32) {
    %c0_i32 = arith.constant 0 : i32
    %c0_i32_0 = arith.constant 0 : i32
    return %arg0, %arg1, %c0_i32 : i32, i32, i32
  }
  func.func @transform_1(%arg0: i32, %arg1: i32) -> (i32, i32) {
    %c0_i32 = arith.constant 0 : i32
    %c0_i32_0 = arith.constant 0 : i32
    %c0_i32_1 = arith.constant 0 : i32
    return %c0_i32, %c0_i32_0 : i32, i32
  }
  func.func @transform_2(%arg0: i32, %arg1: i32) -> (i32, i32) {
    %c0_i32 = arith.constant 0 : i32
    %c0_i32_0 = arith.constant 0 : i32
    %c0_i32_1 = arith.constant 0 : i32
    return %c0_i32, %c0_i32_0 : i32, i32
  }
  func.func @transform_3(%arg0: i32, %arg1: i32) -> (i32, i32) {
    %c0_i32 = arith.constant 0 : i32
    %c0_i32_0 = arith.constant 0 : i32
    %c0_i32_1 = arith.constant 0 : i32
    return %c0_i32, %c0_i32_0 : i32, i32
  }
  func.func @transform_4(%arg0: i32, %arg1: i32) -> (i32, i32) {
    %c0_i32 = arith.constant 0 : i32
    %c0_i32_0 = arith.constant 0 : i32
    %c0_i32_1 = arith.constant 0 : i32
    return %c0_i32, %c0_i32_0 : i32, i32
  }
  func.func @transform_5(%arg0: i32, %arg1: i32) -> (i32, i32) {
    %c0_i32 = arith.constant 0 : i32
    %c0_i32_0 = arith.constant 0 : i32
    %c0_i32_1 = arith.constant 0 : i32
    return %c0_i32, %c0_i32_0 : i32, i32
  }
  func.func @transform_6(%arg0: i32, %arg1: i32) -> (i32, i32) {
    %c0_i32 = arith.constant 0 : i32
    %c0_i32_0 = arith.constant 0 : i32
    %c0_i32_1 = arith.constant 0 : i32
    return %c0_i32, %c0_i32_0 : i32, i32
  }
  func.func @transform_7(%arg0: i32, %arg1: i32) -> (i32, i32, i32) {
    %c0_i32 = arith.constant 0 : i32
    %c0_i32_0 = arith.constant 0 : i32
    return %arg0, %arg1, %c0_i32 : i32, i32, i32
  }
}

</mosaic_0001>

<bundles_post_ra>
// kernel: tpu_custom_call.1
= control target key start
LH: loop header
LB: loop body
LE: loop exit
PB: predicated region body
PF: predicated region fallthrough
CT: control target
= control target key end

     0   :  { %12 = vsyncpa [#allocation3], 0  ;;  %s1198_s0 = inlined_call_operand.vmem [shape: f32[2,8,20], index: 0, kind: input, shape index: {}]   ;;  %s1199_s1 = inlined_call_operand.hbm [shape: f32[20,32], index: 1, kind: input, shape index: {}]   ;;  %s1200_s2 = inlined_call_operand.vmem [shape: f32[1,32], index: 2, kind: input, shape index: {}]   ;;  %s1201_s3 = inlined_call_operand.vmem [shape: f32[32,32], index: 3, kind: input, shape index: {}]   ;;  %s1202_s4 = inlined_call_operand.vmem [shape: f32[1,32], index: 4, kind: input, shape index: {}]   ;;  %s1203_s5 = inlined_call_operand.vmem [shape: f32[32,8], index: 5, kind: input, shape index: {}]   ;;  %s1204_s6 = inlined_call_operand.vmem [shape: f32[1,8], index: 6, kind: input, shape index: {}]   ;;  %s1205_s7 = inlined_call_operand.hbm [shape: f32[2,8,8], index: 7, kind: output, shape index: {}]  }
   0x1   :  { %13 = vsyncpa [#allocation4], 0 }
   0x2   :  { %15 = vsyncpa [#allocation4 + $0x1], 0  ;;  %s1012_s24 = smov 0   ;;  %s1014_s25 = smov 0  }
   0x3   :  { %s1016_s26 = smov 0   ;;  %s1018_s27 = smov 0  }
   0x4   :  { %s1020_s28 = smov 0   ;;  %s1022_s29 = smov 0  }
   0x5 LB: > { %s698_s30 = sadd.s32 4294967295, %s963_s29   ;;  %s699_s8 = sadd.s32 4294967294, %s963_s29   ;;  %s963_s29 = sphi %s1022_s29, %s21_s29   ;;  %s959_s28 = sphi %s1020_s28, %s1223_s28   ;;  %s955_s27 = sphi %s1018_s27, %s1222_s27   ;;  %s951_s26 = sphi %s1016_s26, %s1221_s26   ;;  %s947_s25 = sphi %s1014_s25, %s1220_s25   ;;  %s943_s24 = sphi %s1012_s24, %s1219_s24  }
   0x6   : > { %s33_s9 = sadd.s32 1, %s959_s28  ;;  %s196_s10 = sadd.s32 1, %s951_s26 }
   0x7   : > { %p35_p0 = scmp.ge.s32.totalorder %s33_s9, 2  ;;  %p206_p1 = scmp.ne.s32.totalorder %s951_s26, %s947_s25 }
   0x8   : > { %p207_p2 = scmp.eq.s32.totalorder %s698_s30, 1  ;;  %p212_p3 = scmp.ne.s32.totalorder %s947_s25, %s943_s24 }
   0x9   : > { %s1225_s9 = smov (%p35_p0, %s33_s9), 0  ;;  %p213_p5 = scmp.eq.s32.totalorder %s699_s8, 1 }
   0xa   : > { %p1052_p4 = por %p207_p2, %p206_p1  ;;  %s191_s12 = ssub.s32 %s959_s28, %s1225_s9 }
   0xb   : > { %p700_p6 = scmp.ge.s32.totalorder %s963_s29, 1  ;;  %p194_p7 = scmp.eq.s32.totalorder %s191_s12, 0 }
   0xc   : > { %s1210_s11 = scalar_select %p1052_p4, 1, 0 }
   0xd   : > { %p1059_p8 = por %p213_p5, %p212_p3  ;;  %p220_p9 = scmp.lt.s32.totalorder %s963_s29, 3 }
   0xe   : > { %s1065_s14 = scalar_select %p194_p7, %s951_s26, %s196_s10  }
   0xf   : > { %s1211_s13 = scalar_select %p1059_p8, 1, 0 }
  0x10   : > { %p1067_p10 = pnand %p700_p6, %p220_p9  ;;  %p1071_p11 = scmp.eq.s32.totalorder %s698_s30, 0 }
  0x11   : > { %s965_s17 = smov [#allocation2]   ;;  %s853_s22 = scalar_lea.hbm %s1199_s1, 384 }
  0x12   : > { %s1212_s15 = scalar_select %p1067_p10, 1, 0 }
  0x13   : > { %s1213_s16 = scalar_select %p1071_p11, 1, 0 }
  0x14   : > { %p784_p12 = pneg %p1067_p10  ;;  %s232_s18 = sshll.u32 %s965_s17, 4  ;;  %s233_s18 = int_to_ptr.vmem [resolvable:$true] %s232_s18 }
  0x15   : > { %p854_p0 = scmp.ne.s32.totalorder %s1199_s1, %s853_s22  ;;  %p860_p5 = scmp.lt.u32.totalorder %s853_s22, %s1199_s1 }
  0x16   : > { %p1079_p13 = pnand %p1071_p11, %p784_p12 }
  0x18   : > { %p855_p1 = pneg %p1079_p13 }
  0x1a   : > { %p856_p2 = pnand %p855_p1, %p854_p0 }
  0x1c   : > { %p857_p3 = pneg %p856_p2 }
  0x1e   : > { %p862_p6 = pnand %p860_p5, %p857_p3 }
  0x20   : > { %865 = shalt.err (!%p862_p6)
}
  0x21   : > { %s866_s12 = scalar_lea.vmem %s233_s18, 384  ;;  %p874_p8 = scmp.lt.s32.totalorder %s233_s18, %s233_s18 }
  0x22   : > { %p867_p7 = scmp.ne.s32.totalorder %s233_s18, %s866_s12  ;;  %p875_p4 = scmp.lt.s32.totalorder %s866_s12, %s866_s12 }
  0x24   : > { %p869_p9 = pnand %p867_p7, %p855_p1  ;;  %p876_p11 = por %p875_p4, %p874_p8 }
  0x26   : > { %p870_p12 = pneg %p869_p9 }
  0x28   : > { %p877_p10 = pnand %p876_p11, %p870_p12 }
  0x2a   : > { %880 = shalt.err (!%p877_p10)
}
  0x2b   : > { %s966_s17 = smov 128   ;;  %s967_s20 = smov 8  }
  0x2c   : > { %787 = dma.hbm_to_vmem [thread:$0]  (!%p1079_p13), %s1199_s1, 384, %s233_s18, [#allocation3], %s966_s17, %s966_s17, %s967_s20  }
  0x2d   : > { %p1215_p0 = scmp.ne.s32.totalorder %s1212_s15, 0 }
  0x2e   : > { %p1216_p2 = scmp.ne.s32.totalorder (!%p1215_p0), %s1213_s16, 0 }
  0x2f   : > { %273 = sbr.rel (%p1215_p0) target bundleno = 765 (0x2fd), region = 48 }
  0x36   : > { %934 = dma.done.wait (%p1216_p2), [#allocation3], 384  }
  0x37   : > { %936 = vsyncadd (%p1216_p2), [#allocation3], 4294966912  ;;  %v968_v0 = vmov 0.0|0.0   ;;  %vm969_vm0 = vmmov 0   ;;  %v970_v1 = vmov 0.0   ;;  %p307_p4 = scmp.lt.s32.totalorder %s955_s27, 1  ;;  %v574_v42 = vlaneseq }
  0x38   : > { %763 = vmatprep.subr.bf16.mxu0 %v968_v0  ;;  %738 = vmatprep.mubr.msk.f32.mxu0 %vm969_vm0, %v970_v1  ;;  %v315_v2 = vld [vmem:[#allocation2] sm:$0xff]  ;;  %v316_v3 = vld [vmem:[#allocation2 + $0x8] sm:$0xff]  ;;  %v317_v8 = vld [vmem:[#allocation2 + $0x10] sm:$0xf]  ;;  %vm329_vm1 = vcmask 1043456   ;;  %vm325_vm2 = vcmask 162816  }
  0x39   : > { %766 = vmatprep.subr.bf16.mxu1 %v968_v0  ;;  %749 = vmatprep.mubr.msk.f32.mxu1 %vm969_vm0, %v970_v1  ;;  %s308_s15 = scalar_select %p307_p4, %s955_s27, 1  ;;  %v764_v4 = vpack.c.bf16 %v316_v3, %v315_v2  ;;  %v404_v5 = vld [vmem:[%s1201_s3] sm:$0xff]  ;;  %v405_v6 = vld [vmem:[%s1201_s3 + $0x8] sm:$0xff]  ;;  %v406_v10 = vld [vmem:[%s1201_s3 + $0x10] sm:$0xff]  ;;  %vm415_vm3 = vcmask 261120   ;;  %v575_v48 = vand.u32 127, %v574_v42 }
  0x3a   : > { %v767_v7 = vpack.c.bf16 %v405_v6, %v404_v5  ;;  %v407_v11 = vld [vmem:[%s1201_s3 + $0x18] sm:$0xff]  ;;  %v490_v13 = vld [vmem:[%s1203_s5] sm:$0xff]  ;;  %v491_v14 = vld [vmem:[%s1203_s5 + $0x8] sm:$0xff]  ;;  %s715_s16 = sshll.u32 %s955_s27, 7  ;;  %vm598_vm7 = vcmask 64512   ;;  %p1217_p10 = scmp.ne.s32.totalorder %s1210_s11, 0 }
  0x3b   : > { %s706_s18 = sshll.u32 %s308_s15, 3  ;;  %765 = vmatpush3.bf16.msra.mxu0 %v764_v4  ;;  %v770_v12 = vpack.c.bf16 %v407_v11, %v406_v10  ;;  %v773_v15 = vpack.c.bf16 %v491_v14, %v490_v13  ;;  %v707_v16 = vld [vmem:[%s1200_s2] ss:$0 sm:$0xff]  ;;  %v492_v21 = vld [vmem:[%s1203_s5 + $0x10] sm:$0xff]  ;;  %v493_v22 = vld [vmem:[%s1203_s5 + $0x18] sm:$0xff]  ;;  %vm596_vm6 = vcmp.ge.s32.totalorder %v575_v48, 4 }
  0x3c   : > { %s313_s12 = scalar_lea.vmem %s1198_s0, %s706_s18  ;;  %736 = vmatprep.subr.mxu0 %v970_v1  ;;  %768 = vmatpush3.bf16.msra.mxu1 %v767_v7  ;;  %v776_v23 = vpack.c.bf16 %v493_v22, %v492_v21  ;;  %v710_v24 = vld [vmem:[%s1202_s4] ss:$0 sm:$0xff]  ;;  %s304_s18 = sand.u32 1, %s947_s25  }
  0x3d   : > { %v314_v9 = vld [vmem:[%s313_s12] sm:$0xff]  ;;  %769 = vmatprep.subr.bf16.mxu1 %v968_v0  ;;  %s705_s19 = sshll.u32 %s304_s18, 3  ;;  %s1151_s12 = scalar_lea.hbm %s1205_s7, %s715_s16 }
  0x3e   : > { %v712_v29 = vld [vmem:[%s1204_s6] ss:$0 sm:$0xff]  ;;  %s306_s22 = scalar_lea.vmem [#allocation5], %s705_s19  ;;  %s601_s17 = scalar_lea.sflag [#allocation4], %s304_s18 }
  0x3f   : > { %737 = vmatpush3.msk.msra.mxu0 %vm329_vm1, %v317_v8  ;;  %s615_s30 = sshll.u32 %s306_s22, 4  ;;  %s971_s27 = smov [#allocation5]   ;;  %s1153_s30 = int_to_ptr.vmem [resolvable:$true] %s615_s30 }
  0x40   : > { %739 = vmatmul.mubr.msk.f32.vlgmr.msra.gmra.mrb[0].mxu0 %vm325_vm2, %v314_v9  ;;  %772 = vmatprep.subr.bf16.mxu0 %v968_v0  ;;  %s881_s20 = scalar_lea.vmem %s1153_s30, 128  ;;  %s885_s21 = sshll.u32 %s971_s27, 4  ;;  %s886_s21 = int_to_ptr.vmem [resolvable:$false] %s885_s21 }
  0x41   : > { %760 = vmatprep.mubr.msk.f32.mxu0 %vm969_vm0, %v970_v1  ;;  %771 = vmatpush3.bf16.msra.mxu1 %v770_v12  ;;  %p882_p8 = scmp.ne.s32.totalorder %s1153_s30, %s881_s20  ;;  %s887_s23 = scalar_lea.vmem %s886_s21, 256 }
  0x42   : > { %774 = vmatpush3.bf16.msra.mxu0 %v773_v15  ;;  %p888_p1 = scmp.lt.s32.totalorder %s1153_s30, %s886_s21  ;;  %p889_p3 = scmp.lt.s32.totalorder %s887_s23, %s881_s20 }
  0x43   : > { %775 = vmatprep.subr.bf16.mxu0 %v968_v0  ;;  %p883_p11 = pnand %p882_p8, %p1217_p10 }
  0x44   : > { %p890_p5 = por %p889_p3, %p888_p1 }
  0x45   : > { %p884_p13 = pneg %p883_p11 }
  0x46   : > { %777 = vmatpush3.bf16.msra.mxu0 %v776_v23 }
  0x47   : > { %p891_p6 = pnand %p890_p5, %p884_p13 }
 0x113   : > { %v399_v17 = vpop.f32.mrb[0].mxu0 }
 0x114   : > { %v400_v18 = vadd.f32 %v707_v16, %v399_v17  ;;  %v740_v19 = vpop.f32.mrb[1].mxu0 }
 0x116   : > { %v403_v20 = vmax.f32 %v400_v18, 0.0 }
 0x118   : > { %750 = vmatmul.mubr.msk.f32.vlgmr.msra.gmra.mrb[0].mxu1 %vm415_vm3, %v403_v20 }
 0x1eb   : > { %v485_v25 = vpop.f32.mrb[0].mxu1 }
 0x1ec   : > { %v486_v26 = vadd.f32 %v710_v24, %v485_v25  ;;  %v751_v27 = vpop.f32.mrb[1].mxu1 }
 0x1ee   : > { %v489_v28 = vmax.f32 %v486_v26, 0.0 }
 0x1f0   : > { %761 = vmatmul.mubr.msk.f32.vlgmr.msra.gmra.mrb[2].mxu0 %vm415_vm3, %v489_v28 }
 0x2c3   : > { %v570_v30 = vpop.f32.mrb[2].mxu0 }
 0x2c4   : > { %v571_v31 = vadd.f32 %v712_v29, %v570_v30  ;;  %v762_v32 = vpop.f32.mrb[3].mxu0 }
 0x2c6   : > { %v579_v33 = vand.u32 2147483647, %v571_v31  ;;  %v576_v45 = vmax.f32 %v571_v31, 0.0  ;;  %vm577_vm5 = vcmp.ne.f32.partialorder %v571_v31, %v571_v31 }
 0x2c8   : > { %v580_v34 = vsub.f32 0.0, %v579_v33 }
 0x2ca   : > { %v581_v35 = vmul.f32 1.442695, %v580_v34 }
 0x2cc   : > { %849 = vpow2.f32 %v581_v35 }
 0x2d6   : > { %v850_v36 = vpop.eup %849 }
 0x2d7   : > { %v583_v37 = vadd.f32 1.0, %v850_v36  ;;  %v586_v38 = vmul.f32 -0.5, %v850_v36  ;;  %v589_v40 = vand.u32 2147483647, %v850_v36 }
 0x2d9   : > { %851 = vlog2.f32 %v583_v37  ;;  %v587_v39 = vadd.f32 1.0, %v586_v38  ;;  %vm590_vm4 = vcmp.lt.f32.partialorder %v589_v40, 0.0004427343 }
 0x2db   : > { %v588_v44 = vmul.f32 %v850_v36, %v587_v39 }
 0x2e3   : > { %v852_v41 = vpop.eup %851 }
 0x2e4   : > { %v585_v43 = vmul.f32 0.6931472, %v852_v41 }
 0x2e6   : > { %v591_v46 = vsel %vm590_vm4, %v588_v44, %v585_v43 }
 0x2e7   : > { %v592_v47 = vadd.f32 %v591_v46, %v576_v45 }
 0x2e9   : > { %v593_v49 = vsel %vm577_vm5, %v571_v31, %v592_v47 }
 0x2ea   : > { %v594_v50 = vmul.f32 0.9, %v593_v49 }
 0x2ec   : > { %v595_v51 = vadd.f32 0.1, %v594_v50 }
 0x2ee   : > { %v597_v52 = vsel %vm596_vm6, %v595_v51, %v571_v31 }
 0x2ef   : > { %599 = vst.msk [vmem:[%s306_s22] sm:$0xff] %vm598_vm7, %v597_v52 }
 0x2f0   : > { %894 = shalt.err (!%p891_p6)
}
 0x2f1   : > { %s895_s15 = scalar_lea.hbm %s1151_s12, 128  ;;  %s899_s16 = scalar_lea.hbm %s1205_s7, 256 }
 0x2f2   : > { %p896_p7 = scmp.ne.s32.totalorder %s1151_s12, %s895_s15  ;;  %p900_p0 = scmp.lt.u32.totalorder %s1151_s12, %s1205_s7 }
 0x2f3   : > { %p901_p2 = scmp.lt.u32.totalorder %s899_s16, %s895_s15  ;;  %p903_p8 = scmp.lt.u32.totalorder %s895_s15, %s1151_s12 }
 0x2f4   : > { %p897_p9 = pnand %p896_p7, %p1217_p10 }
 0x2f5   : > { %p902_p4 = por %p901_p2, %p900_p0 }
 0x2f6   : > { %p898_p12 = pneg %p897_p9 }
 0x2f7   : > { %p904_p11 = por %p903_p8, %p902_p4 }
 0x2f9   : > { %p905_p13 = pnand %p904_p11, %p898_p12 }
 0x2fb   : > { %908 = shalt.err (!%p905_p13)
}
 0x2fc   : > { %782 = dma.vmem_to_hbm [thread:$0]  (%p1217_p10), %s1153_s30, 128, %s1151_s12, %s601_s17  }
 0x2fd PF: > { %p794_p1 = scmp.ge.s32.totalorder %s963_s29, 2  ;;  %s627_s10 = sand.u32 1, %s943_s24  }
 0x2fe   : > { %p1218_p3 = scmp.ne.s32.totalorder %s1211_s13, 0  ;;  %s628_s20 = scalar_lea.sflag [#allocation4], %s627_s10 }
 0x300   : > { %p789_p5 = pnand %p794_p1, %p1218_p3 }
 0x302   : > { %938 = dma.done.wait (!%p789_p5), %s628_s20, 128  }
 0x303   : > { %940 = vsyncadd (!%p789_p5), %s628_s20, 4294967168  ;;  %s21_s29 = sadd.s32 1, %s963_s29   ;;  %s1219_s24 = smov %s947_s25 }
 0x304   : > { %p18_p6 = scmp.ge.s32.totalorder %s21_s29, 4   ;;  %s1220_s25 = smov %s951_s26 }
 0x305   : > { %s1221_s26 = smov %s1065_s14  ;;  %s1222_s27 = smov %s959_s28 }
 0x306   : > { %s1223_s28 = smov %s1225_s9  ;;  %20 = sbr.rel (!%p18_p6) target bundleno = 5 (0x5), region = 88 }
 0x30d   :  { %633 = vsyncpa [#allocation3], 1 }
 0x30e   :  { %635 = vsyncpa [#allocation3 + $0x1], 1 }
 0x30f   :  { %636 = vsyncpa [#allocation4], 1 }
 0x310   :  { %638 = vsyncpa [#allocation4 + $0x1], 1 }

</bundles_post_ra>
